<compile_context>
chip_gen: v7x
topology: tpu7x:2x2x1
jax: 0.10.0
libtpu: 0.0.40
codegen_flags: <defaults>
</compile_context>

<pallas_src>
import functools
import math

import jax
import jax.numpy as jnp
from jax.experimental import pallas as pl
from jax.experimental.pallas import tpu as pltpu


# ----------------------------------------------------------------------------
# Helpers
# ----------------------------------------------------------------------------
def _cdiv(a: int, b: int) -> int:
    return -(-a // b)


def _round_up(v: int, m: int) -> int:
    return _cdiv(v, m) * m


def _vmem_budget_bytes() -> int:
    """~70% of physical VMEM, capped: ~90 MiB on v5e/v6e (128 MiB phys),
    ~45 MiB on v7x (64 MiB phys) -> headroom for compiler scratch/spills."""
    phys = 64 * 1024 * 1024
    try:
        phys = int(pltpu.get_tpu_info().vmem_capacity_bytes)
    except Exception:
        pass
    return min(int(phys * 0.7), 100 * 1024 * 1024)


def _pick_token_tile(n_tokens: int, hp: int, use_node: bool,
                     x_bytes: int, out_bytes: int, budget_bytes: int) -> int:
    n_w = 5 if use_node else 1
    resident = n_w * hp * hp * 2 + hp * 4                # bf16 weights + f32 bias row
    # per-row VMEM: double-buffered x/out tiles + in-kernel intermediates
    inter = hp * 2 + (4 if use_node else 1) * hp * 4     # bf16 x copy + f32 dots/select/scratch
    per_row = 2 * hp * x_bytes + 2 * hp * out_bytes + inter
    avail = budget_bytes - resident
    if avail < per_row * 8:
        # TODO(synk): K-tile the contraction dim (stream (tk, Hp) weight slabs,
        # f32 scratch accumulator, pl.when init/finalize) for very large hidden_dim.
        raise NotImplementedError(
            "hidden_dim too large for resident-weight kernel; needs K-tiling")
    tm = max(8, min(1024, (avail // per_row // 8) * 8))
    # Keep >= ~8 grid steps so v7x's two TensorCores both get work from the
    # "parallel" grid axis (harmless on single-core v5e/v6e at these sizes).
    tm = min(tm, max(8, _round_up(_cdiv(max(n_tokens, 1), 8), 8)))
    return int(tm)


# ----------------------------------------------------------------------------
# Kernels
# ----------------------------------------------------------------------------
def _node_kernel(x_ref, w_ref, b_ref, o_ref, acc_ref, *, seq_len: int):
    """use_node=True path.

    x_ref:   (TM, Hp)       token tile (input dtype)
    w_ref:   (5, Hp, Hp)    bf16 transposed weights, order [W_s^T, W_r^T, W_o^T, W_a^T, W_v^T]
    b_ref:   (1, Hp)        f32 pre-summed five biases
    o_ref:   (TM, Hp)
    acc_ref: (TM, Hp) f32   scratch for the gated sequence-start path
    """
    tm = x_ref.shape[0]
    xc = x_ref[...].astype(w_ref.dtype)                   # single bf16 cast

    # Scalar: sequence position of the first row of this tile.
    start = pl.program_id(0) * tm
    base = jax.lax.rem(start, jnp.int32(seq_len))

    # Per-row position as a (TM, 1) column -> VPU work ~TM, not TM*Hp.
    local = base + jax.lax.broadcasted_iota(jnp.int32, (tm, 1), 0)
    # local < tm + seq_len (small), so the f32 floor-division modulo is exact.
    q = jnp.floor((local.astype(jnp.float32) + 0.5) * (1.0 / float(seq_len)))
    s = local - q.astype(jnp.int32) * seq_len             # (TM, 1) in [0, seq_len)

    after = s >= 3
    odd = (s & 1) == 1

    # Bulk path: positions >= 3 use W_a (odd) or W_v (even); two dots, parity-selected.
    dot_a = jnp.dot(xc, w_ref[3], preferred_element_type=jnp.float32)
    dot_v = jnp.dot(xc, w_ref[4], preferred_element_type=jnp.float32)
    bulk = jnp.where(odd, dot_a, dot_v)

    # Special path: positions 0/1/2 use W_s/W_r/W_o. Only runs when this tile
    # actually contains a sequence start (scalar gate; skipped otherwise).
    has_special = jnp.logical_or(base <= 2, base + tm > seq_len)

    @pl.when(has_special)
    def _():
        zero = jnp.zeros_like(xc)
        spec = jnp.dot(jnp.where(s == 0, xc, zero), w_ref[0],
                       preferred_element_type=jnp.float32)
        spec = spec + jnp.dot(jnp.where(s == 1, xc, zero), w_ref[1],
                              preferred_element_type=jnp.float32)
        spec = spec + jnp.dot(jnp.where(s == 2, xc, zero), w_ref[2],
                              preferred_element_type=jnp.float32)
        acc_ref[...] = spec

    @pl.when(jnp.logical_not(has_special))
    def _():
        acc_ref[...] = jnp.zeros_like(acc_ref)

    out = jnp.where(after, bulk, acc_ref[...]) + b_ref[...]
    o_ref[...] = out.astype(o_ref.dtype)


def _linear_kernel(x_ref, w_ref, b_ref, o_ref):
    """use_node=False path: y = x @ W^T + b (W^T pre-transposed, bf16)."""
    acc = jnp.dot(x_ref[...].astype(w_ref.dtype), w_ref[...],
                  preferred_element_type=jnp.float32)
    o_ref[...] = (acc + b_ref[...]).astype(o_ref.dtype)


# ----------------------------------------------------------------------------
# Module wrapper
# ----------------------------------------------------------------------------
class PrepareForMultiHeadAttention:
    def __init__(self, hidden_dim: int, heads: int, bias: bool, use_node: bool,
                 key, compute_dtype=jnp.bfloat16):
        self.hidden_dim = hidden_dim
        self.heads = heads
        self.bias = bias
        self.use_node = use_node
        self.compute_dtype = compute_dtype
        self.hp = _round_up(hidden_dim, 128)           # lane-dense matmul / store width

        bound = 1.0 / math.sqrt(hidden_dim)            # nn.Linear-style uniform init
        kw, kb = jax.random.split(key)
        pad_h = self.hp - hidden_dim

        if use_node:
            # stacked weights for layers [s, r, o, a, v]: (5, H_out, H_in)
            self.W = jax.random.uniform(kw, (5, hidden_dim, hidden_dim),
                                        jnp.float32, -bound, bound)
            self.b = jax.random.uniform(kb, (5, hidden_dim),
                                        jnp.float32, -bound, bound)
            wt = jnp.transpose(self.W, (0, 2, 1))                      # (5, H_in, H_out)
            wt = jnp.pad(wt, ((0, 0), (0, pad_h), (0, pad_h)))
            self.w_dev = wt.astype(compute_dtype)                      # (5, Hp, Hp) bf16
            # The reference adds all five biases unconditionally -> pre-sum.
            b_sum = jnp.sum(self.b, axis=0)
            self.b_dev = jnp.pad(b_sum, (0, pad_h)).reshape(1, self.hp)  # (1, Hp) f32
        else:
            self.W = jax.random.uniform(kw, (hidden_dim, hidden_dim),
                                        jnp.float32, -bound, bound)
            if bias:
                self.b = jax.random.uniform(kb, (hidden_dim,),
                                            jnp.float32, -bound, bound)
            else:
                self.b = jnp.zeros((hidden_dim,), jnp.float32)
            wt = jnp.pad(self.W.T, ((0, pad_h), (0, pad_h)))
            self.w_dev = wt.astype(compute_dtype)                      # (Hp, Hp) bf16
            self.b_dev = jnp.pad(self.b, (0, pad_h)).reshape(1, self.hp)

    # exact reproduction of the torch mask construction (reference only)
    @staticmethod
    def _position_masks(seq_len: int):
        mask_s = [1] + [0] * (seq_len - 1)
        mask_r = [0, 1] + [0] * (seq_len - 2)
        mask_o = [0, 0, 1] + [0] * (seq_len - 3)
        mask_a = [0, 0, 0] + [1, 0] * int((seq_len - 3) / 2)
        mask_v = [0, 0, 0] + [0, 1] * int((seq_len - 3) / 2)
        return jnp.array([mask_s, mask_r, mask_o, mask_a, mask_v], jnp.float32)

    def __call__(self, x, out_dtype=None):
        B, S, H = x.shape
        assert H == self.hidden_dim
        out_dtype = jnp.dtype(out_dtype) if out_dtype is not None else x.dtype
        N = B * S
        hp = self.hp

        xf = x.reshape(N, H)
        if hp != H:
            xf = jnp.pad(xf, ((0, 0), (0, hp - H)))

        budget = _vmem_budget_bytes()
        tm = _pick_token_tile(N, hp, self.use_node,
                              xf.dtype.itemsize, out_dtype.itemsize, budget)
        n_pad = _round_up(N, tm)
        if n_pad != N:
            xf = jnp.pad(xf, ((0, n_pad - N), (0, 0)))
        grid = (n_pad // tm,)

        x_spec = pl.BlockSpec((tm, hp), lambda i: (i, 0))
        o_spec = pl.BlockSpec((tm, hp), lambda i: (i, 0))
        b_spec = pl.BlockSpec((1, hp), lambda i: (0, 0))     # resident in VMEM

        cparams = pltpu.CompilerParams(
            dimension_semantics=("parallel",),
            vmem_limit_bytes=int(budget),
        )

        if self.use_node:
            if S < 3 or (S - 3) % 2 != 0:
                raise ValueError(
                    "use_node masks require seq_len >= 3 and (seq_len - 3) even")
            yf = pl.pallas_call(
                functools.partial(_node_kernel, seq_len=S),
                out_shape=jax.ShapeDtypeStruct((n_pad, hp), out_dtype),
                grid=grid,
                in_specs=[x_spec,
                          pl.BlockSpec((5, hp, hp), lambda i: (0, 0, 0)),
                          b_spec],
                out_specs=o_spec,
                scratch_shapes=[pltpu.VMEM((tm, hp), jnp.float32)],
                compiler_params=cparams,
            )(xf, self.w_dev, self.b_dev)
        else:
            yf = pl.pallas_call(
                _linear_kernel,
                out_shape=jax.ShapeDtypeStruct((n_pad, hp), out_dtype),
                grid=grid,
                in_specs=[x_spec,
                          pl.BlockSpec((hp, hp), lambda i: (0, 0)),
                          b_spec],
                out_specs=o_spec,
                compiler_params=cparams,
            )(xf, self.w_dev, self.b_dev)

        yf = yf[:N, :H]
        return yf.reshape(B, S, self.heads, H // self.heads)

    # pure-JAX f32 reference for correctness checking
    def reference(self, x):
        B, S, H = x.shape
        x32 = x.astype(jnp.float32)
        if self.use_node:
            masks = self._position_masks(S)                     # (5, S)
            out = jnp.zeros((B, S, H), jnp.float32)
            for k in range(5):
                out = out + (x32 * masks[k][None, :, None]) @ self.W[k].T + self.b[k]
        else:
            out = x32 @ self.W.T + self.b
        return out.reshape(B, S, self.heads, H // self.heads).astype(x.dtype)


# ----------------------------------------------------------------------------
if __name__ == "__main__":
    key = jax.random.PRNGKey(0)
    kx, kx2, kp1, kp2, kp3, kp4 = jax.random.split(key, 6)

    B, S, H, HEADS = 2, 9, 32, 4            # S odd so (S-3) is even, as the torch masks require
    x = jax.random.normal(kx, (B, S, H), jnp.float32)

    # use_node=True, short sequences: every tile hits the gated "special" path
    mod_node = PrepareForMultiHeadAttention(H, HEADS, bias=True, use_node=True, key=kp1)
    y_node = jax.block_until_ready(mod_node(x))
    ref_node = mod_node.reference(x)
    assert y_node.shape == (B, S, HEADS, H // HEADS)
    assert jnp.allclose(y_node, ref_node, atol=3e-2, rtol=3e-2), \
        float(jnp.max(jnp.abs(y_node - ref_node)))

    # use_node=True, long sequence: most tiles take the 2-matmul parity bulk path
    B2, S2 = 1, 131                          # (S2 - 3) even
    x2 = jax.random.normal(kx2, (B2, S2, H), jnp.float32)
    mod_node2 = PrepareForMultiHeadAttention(H, HEADS, bias=True, use_node=True, key=kp2)
    y2 = jax.block_until_ready(mod_node2(x2))
    ref2 = mod_node2.reference(x2)
    assert jnp.allclose(y2, ref2, atol=3e-2, rtol=3e-2), \
        float(jnp.max(jnp.abs(y2 - ref2)))

    # use_node=False branch (single linear, with bias)
    mod_lin = PrepareForMultiHeadAttention(H, HEADS, bias=True, use_node=False, key=kp3)
    y_lin = jax.block_until_ready(mod_lin(x))
    ref_lin = mod_lin.reference(x)
    assert y_lin.shape == (B, S, HEADS, H // HEADS)
    assert jnp.allclose(y_lin, ref_lin, atol=3e-2, rtol=3e-2), \
        float(jnp.max(jnp.abs(y_lin - ref_lin)))

    # use_node=False branch, bias=False
    mod_nb = PrepareForMultiHeadAttention(H, HEADS, bias=False, use_node=False, key=kp4)
    y_nb = jax.block_until_ready(mod_nb(x))
    ref_nb = mod_nb.reference(x)
    assert jnp.allclose(y_nb, ref_nb, atol=3e-2, rtol=3e-2)

    print("KERNEL_OK")
</pallas_src>

<mosaic_0001>
module attributes {stable_mosaic.version = 11 : i64} {
  func.func @_node_kernel(%arg0: i32, %arg1: memref<8x128xf32, #tpu.memory_space<vmem>>, %arg2: memref<5x128x128xbf16, #tpu.memory_space<vmem>>, %arg3: memref<1x128xf32, #tpu.memory_space<vmem>>, %arg4: memref<8x128xf32, #tpu.memory_space<vmem>>, %arg5: memref<8x128xf32, #tpu.memory_space<vmem>>) attributes {dimension_semantics = [#tpu.dimension_semantics<parallel>], iteration_bounds = array<i64: 3>, scalar_prefetch = 0 : i64, scratch_operands = 1 : i64, tpu.core_type = #tpu.core_type<tc>, window_params = [{transform_indices = @transform_0, window_bounds = array<i64: 8, 128>}, {pipeline_mode = #tpu.pipeline_mode<synchronous>, transform_indices = @transform_1, window_bounds = array<i64: 5, 128, 128>}, {pipeline_mode = #tpu.pipeline_mode<synchronous>, transform_indices = @transform_2, window_bounds = array<i64: 1, 128>}, {transform_indices = @transform_3, window_bounds = array<i64: 8, 128>}]} {
    %c0 = arith.constant 0 : index
    %c0_0 = arith.constant 0 : index
    %0 = vector.load %arg1[%c0, %c0_0] : memref<8x128xf32, #tpu.memory_space<vmem>>, vector<8x128xf32>
    %1 = arith.truncf %0 : vector<8x128xf32> to vector<8x128xbf16>
    %c8_i32 = arith.constant 8 : i32
    %2 = arith.muli %arg0, %c8_i32 : i32
    %c9_i32 = arith.constant 9 : i32
    %3 = arith.remsi %2, %c9_i32 : i32
    %4 = tpu.iota {dimensions = array<i32: 0>} : vector<8x1xi32>
    %5 = vector.broadcast %3 : i32 to vector<8x1xi32>
    %6 = arith.addi %5, %4 : vector<8x1xi32>
    %7 = arith.sitofp %6 : vector<8x1xi32> to vector<8x1xf32>
    %cst = arith.constant 5.000000e-01 : f32
    %8 = vector.broadcast %cst : f32 to vector<8x1xf32>
    %9 = arith.addf %7, %8 : vector<8x1xf32>
    %cst_1 = arith.constant 0.111111112 : f32
    %10 = vector.broadcast %cst_1 : f32 to vector<8x1xf32>
    %11 = arith.mulf %9, %10 : vector<8x1xf32>
    %12 = math.floor %11 : vector<8x1xf32>
    %13 = arith.fptosi %12 : vector<8x1xf32> to vector<8x1xi32>
    %c9_i32_2 = arith.constant 9 : i32
    %14 = vector.broadcast %c9_i32_2 : i32 to vector<8x1xi32>
    %15 = arith.muli %13, %14 : vector<8x1xi32>
    %16 = arith.subi %6, %15 : vector<8x1xi32>
    %c3_i32 = arith.constant 3 : i32
    %17 = vector.broadcast %c3_i32 : i32 to vector<8x1xi32>
    %18 = arith.cmpi sge, %16, %17 : vector<8x1xi32>
    %c1_i32 = arith.constant 1 : i32
    %19 = vector.broadcast %c1_i32 : i32 to vector<8x1xi32>
    %20 = arith.andi %16, %19 : vector<8x1xi32>
    %c1_i32_3 = arith.constant 1 : i32
    %21 = vector.broadcast %c1_i32_3 : i32 to vector<8x1xi32>
    %22 = arith.cmpi eq, %20, %21 : vector<8x1xi32>
    %c3 = arith.constant 3 : index
    %c0_4 = arith.constant 0 : index
    %c0_5 = arith.constant 0 : index
    %23 = vector.load %arg2[%c3, %c0_4, %c0_5] : memref<5x128x128xbf16, #tpu.memory_space<vmem>>, vector<1x128x128xbf16>
    %24 = vector.shape_cast %23 : vector<1x128x128xbf16> to vector<128x128xbf16>
    %cst_6 = arith.constant dense<0.000000e+00> : vector<8x128xf32>
    %25 = tpu.matmul %1, %24, %cst_6 {dimension_numbers = #tpu.dot_dimension_numbers<[1], [0], [0], [1], [0, 0, 1, 1], [], []>} : vector<8x128xbf16>, vector<128x128xbf16>, vector<8x128xf32> -> vector<8x128xf32>
    %c4 = arith.constant 4 : index
    %c0_7 = arith.constant 0 : index
    %c0_8 = arith.constant 0 : index
    %26 = vector.load %arg2[%c4, %c0_7, %c0_8] : memref<5x128x128xbf16, #tpu.memory_space<vmem>>, vector<1x128x128xbf16>
    %27 = vector.shape_cast %26 : vector<1x128x128xbf16> to vector<128x128xbf16>
    %cst_9 = arith.constant dense<0.000000e+00> : vector<8x128xf32>
    %28 = tpu.matmul %1, %27, %cst_9 {dimension_numbers = #tpu.dot_dimension_numbers<[1], [0], [0], [1], [0, 0, 1, 1], [], []>} : vector<8x128xbf16>, vector<128x128xbf16>, vector<8x128xf32> -> vector<8x128xf32>
    %29 = vector.shape_cast %22 : vector<8x1xi1> to vector<8x1xi1>
    %30 = vector.broadcast %29 : vector<8x1xi1> to vector<8x128xi1>
    %31 = arith.select %30, %25, %28 : vector<8x128xi1>, vector<8x128xf32>
    %c2_i32 = arith.constant 2 : i32
    %32 = arith.cmpi sle, %3, %c2_i32 : i32
    %c8_i32_10 = arith.constant 8 : i32
    %33 = arith.addi %3, %c8_i32_10 : i32
    %c9_i32_11 = arith.constant 9 : i32
    %34 = arith.cmpi sgt, %33, %c9_i32_11 : i32
    %35 = arith.ori %32, %34 : i1
    %36 = arith.extui %35 : i1 to i32
    %c0_i32 = arith.constant 0 : i32
    %37 = arith.cmpi ne, %36, %c0_i32 : i32
    scf.if %37 {
      %cst_19 = arith.constant 0.000000e+00 : bf16
      %49 = vector.broadcast %cst_19 : bf16 to vector<8x128xbf16>
      %c0_i32_20 = arith.constant 0 : i32
      %50 = vector.broadcast %c0_i32_20 : i32 to vector<8x1xi32>
      %51 = arith.cmpi eq, %16, %50 : vector<8x1xi32>
      %52 = vector.shape_cast %51 : vector<8x1xi1> to vector<8x1xi1>
      %53 = vector.broadcast %52 : vector<8x1xi1> to vector<8x128xi1>
      %54 = arith.select %53, %1, %49 : vector<8x128xi1>, vector<8x128xbf16>
      %c0_21 = arith.constant 0 : index
      %c0_22 = arith.constant 0 : index
      %c0_23 = arith.constant 0 : index
      %55 = vector.load %arg2[%c0_21, %c0_22, %c0_23] : memref<5x128x128xbf16, #tpu.memory_space<vmem>>, vector<1x128x128xbf16>
      %56 = vector.shape_cast %55 : vector<1x128x128xbf16> to vector<128x128xbf16>
      %cst_24 = arith.constant dense<0.000000e+00> : vector<8x128xf32>
      %57 = tpu.matmul %54, %56, %cst_24 {dimension_numbers = #tpu.dot_dimension_numbers<[1], [0], [0], [1], [0, 0, 1, 1], [], []>} : vector<8x128xbf16>, vector<128x128xbf16>, vector<8x128xf32> -> vector<8x128xf32>
      %c1_i32_25 = arith.constant 1 : i32
      %58 = vector.broadcast %c1_i32_25 : i32 to vector<8x1xi32>
      %59 = arith.cmpi eq, %16, %58 : vector<8x1xi32>
      %60 = vector.shape_cast %59 : vector<8x1xi1> to vector<8x1xi1>
      %61 = vector.broadcast %60 : vector<8x1xi1> to vector<8x128xi1>
      %62 = arith.select %61, %1, %49 : vector<8x128xi1>, vector<8x128xbf16>
      %c1 = arith.constant 1 : index
      %c0_26 = arith.constant 0 : index
      %c0_27 = arith.constant 0 : index
      %63 = vector.load %arg2[%c1, %c0_26, %c0_27] : memref<5x128x128xbf16, #tpu.memory_space<vmem>>, vector<1x128x128xbf16>
      %64 = vector.shape_cast %63 : vector<1x128x128xbf16> to vector<128x128xbf16>
      %cst_28 = arith.constant dense<0.000000e+00> : vector<8x128xf32>
      %65 = tpu.matmul %62, %64, %cst_28 {dimension_numbers = #tpu.dot_dimension_numbers<[1], [0], [0], [1], [0, 0, 1, 1], [], []>} : vector<8x128xbf16>, vector<128x128xbf16>, vector<8x128xf32> -> vector<8x128xf32>
      %66 = arith.addf %57, %65 : vector<8x128xf32>
      %c2_i32_29 = arith.constant 2 : i32
      %67 = vector.broadcast %c2_i32_29 : i32 to vector<8x1xi32>
      %68 = arith.cmpi eq, %16, %67 : vector<8x1xi32>
      %69 = vector.shape_cast %68 : vector<8x1xi1> to vector<8x1xi1>
      %70 = vector.broadcast %69 : vector<8x1xi1> to vector<8x128xi1>
      %71 = arith.select %70, %1, %49 : vector<8x128xi1>, vector<8x128xbf16>
      %c2 = arith.constant 2 : index
      %c0_30 = arith.constant 0 : index
      %c0_31 = arith.constant 0 : index
      %72 = vector.load %arg2[%c2, %c0_30, %c0_31] : memref<5x128x128xbf16, #tpu.memory_space<vmem>>, vector<1x128x128xbf16>
      %73 = vector.shape_cast %72 : vector<1x128x128xbf16> to vector<128x128xbf16>
      %cst_32 = arith.constant dense<0.000000e+00> : vector<8x128xf32>
      %74 = tpu.matmul %71, %73, %cst_32 {dimension_numbers = #tpu.dot_dimension_numbers<[1], [0], [0], [1], [0, 0, 1, 1], [], []>} : vector<8x128xbf16>, vector<128x128xbf16>, vector<8x128xf32> -> vector<8x128xf32>
      %75 = arith.addf %66, %74 : vector<8x128xf32>
      %c0_33 = arith.constant 0 : index
      %c0_34 = arith.constant 0 : index
      %76 = vector.load %arg5[%c0_33, %c0_34] : memref<8x128xf32, #tpu.memory_space<vmem>>, vector<8x128xf32>
      tpu.vector_store %arg5[%c0_33, %c0_34], %75 {strides = array<i32>} : memref<8x128xf32, #tpu.memory_space<vmem>>, vector<8x128xf32>,
    } else {
    }
    %true = arith.constant true
    %38 = arith.xori %35, %true : i1
    %39 = arith.extui %38 : i1 to i32
    %c0_i32_12 = arith.constant 0 : i32
    %40 = arith.cmpi ne, %39, %c0_i32_12 : i32
    scf.if %40 {
      %cst_19 = arith.constant 0.000000e+00 : f32
      %49 = vector.broadcast %cst_19 : f32 to vector<8x128xf32>
      %c0_20 = arith.constant 0 : index
      %c0_21 = arith.constant 0 : index
      %50 = vector.load %arg5[%c0_20, %c0_21] : memref<8x128xf32, #tpu.memory_space<vmem>>, vector<8x128xf32>
      tpu.vector_store %arg5[%c0_20, %c0_21], %49 {strides = array<i32>} : memref<8x128xf32, #tpu.memory_space<vmem>>, vector<8x128xf32>,
    } else {
    }
    %c0_13 = arith.constant 0 : index
    %c0_14 = arith.constant 0 : index
    %41 = vector.load %arg5[%c0_13, %c0_14] : memref<8x128xf32, #tpu.memory_space<vmem>>, vector<8x128xf32>
    %42 = vector.shape_cast %18 : vector<8x1xi1> to vector<8x1xi1>
    %43 = vector.broadcast %42 : vector<8x1xi1> to vector<8x128xi1>
    %44 = arith.select %43, %31, %41 : vector<8x128xi1>, vector<8x128xf32>
    %c0_15 = arith.constant 0 : index
    %c0_16 = arith.constant 0 : index
    %45 = vector.load %arg3[%c0_15, %c0_16] : memref<1x128xf32, #tpu.memory_space<vmem>>, vector<1x128xf32>
    %46 = vector.broadcast %45 : vector<1x128xf32> to vector<8x128xf32>
    %47 = arith.addf %44, %46 : vector<8x128xf32>
    %c0_17 = arith.constant 0 : index
    %c0_18 = arith.constant 0 : index
    %48 = vector.load %arg4[%c0_17, %c0_18] : memref<8x128xf32, #tpu.memory_space<vmem>>, vector<8x128xf32>
    tpu.vector_store %arg4[%c0_17, %c0_18], %47 {strides = array<i32>} : memref<8x128xf32, #tpu.memory_space<vmem>>, vector<8x128xf32>,
    return
  }
  func.func @transform_0(%arg0: i32) -> (i32, i32) {
    %c0_i32 = arith.constant 0 : i32
    %c0_i32_0 = arith.constant 0 : i32
    return %arg0, %c0_i32 : i32, i32
  }
  func.func @transform_1(%arg0: i32) -> (i32, i32, i32) {
    %c0_i32 = arith.constant 0 : i32
    %c0_i32_0 = arith.constant 0 : i32
    %c0_i32_1 = arith.constant 0 : i32
    %c0_i32_2 = arith.constant 0 : i32
    return %c0_i32, %c0_i32_0, %c0_i32_1 : i32, i32, i32
  }
  func.func @transform_2(%arg0: i32) -> (i32, i32) {
    %c0_i32 = arith.constant 0 : i32
    %c0_i32_0 = arith.constant 0 : i32
    %c0_i32_1 = arith.constant 0 : i32
    return %c0_i32, %c0_i32_0 : i32, i32
  }
  func.func @transform_3(%arg0: i32) -> (i32, i32) {
    %c0_i32 = arith.constant 0 : i32
    %c0_i32_0 = arith.constant 0 : i32
    return %arg0, %c0_i32 : i32, i32
  }
}

</mosaic_0001>

<bundles_post_ra>
// kernel: tpu_custom_call.1
= control target key start
LH: loop header
LB: loop body
LE: loop exit
PB: predicated region body
PF: predicated region fallthrough
CT: control target
= control target key end

     0   :  { %8 = vsyncpa [#allocation4], 0  ;;  %s1637_s0 = inlined_call_operand.hbm [shape: f32[24,128], index: 0, kind: input, shape index: {}]   ;;  %s1638_s1 = inlined_call_operand.hbm [shape: bf16[5,128,128], index: 1, kind: input, shape index: {}]   ;;  %s1639_s2 = inlined_call_operand.vmem [shape: f32[1,128], index: 2, kind: input, shape index: {}]   ;;  %s1640_s3 = inlined_call_operand.hbm [shape: f32[24,128], index: 3, kind: output, shape index: {}]  }
   0x1   :  { %10 = vsyncpa [#allocation4 + $0x1], 0 }
   0x2   :  { %11 = vsyncpa [#allocation7], 0 }
   0x3   :  { %12 = vsyncpa [#allocation5], 0 }
   0x4   :  { %14 = vsyncpa [#allocation5 + $0x1], 0  ;;  %s1364_s12 = smov 0   ;;  %s1366_s13 = smov 0  }
   0x5   :  { %s1368_s14 = smov 0   ;;  %s1370_s15 = smov 0  }
   0x6 LB: > { %s1385_s16 = sadd.s32 4294967295, %s1332_s15   ;;  %s888_s17 = sadd.s32 4294967294, %s1332_s15   ;;  %s1332_s15 = sphi %s1370_s15, %s1662_s15   ;;  %s1328_s14 = sphi %s1368_s14, %s1661_s14   ;;  %s1324_s13 = sphi %s1366_s13, %s1660_s13   ;;  %s1320_s12 = sphi %s1364_s12, %s1659_s12  }
   0x7   : > { %p40_p0 = scmp.ne.s32.totalorder %s1324_s13, %s1320_s12  ;;  %p1641_p1 = scmp.eq.s32.totalorder %s1385_s16, 0 }
   0x8   : > { %p112_p3 = scmp.eq.s32.totalorder %s888_s17, 2  ;;  %p889_p5 = scmp.ge.s32.totalorder %s1332_s15, 1 }
   0x9   : > { %p1394_p4 = por %p1641_p1, %p40_p0  ;;  %p119_p7 = scmp.lt.s32.totalorder %s1332_s15, 4 }
   0xa   : > { %p1399_p6 = por %p112_p3, %p40_p0  ;;  %s1334_s21 = smov [#allocation6]  }
   0xb   : > { %s1644_s18 = scalar_select %p1394_p4, 1, 0 }
   0xc   : > { %s1645_s19 = scalar_select %p1399_p6, 1, 0 }
   0xd   : > { %p1404_p8 = pnand %p889_p5, %p119_p7  ;;  %s131_s22 = sshll.u32 %s1334_s21, 4  ;;  %s132_s22 = int_to_ptr.vmem [resolvable:$true] %s131_s22 }
   0xe   : > { %s1417_s24 = sadd.s32 1, %s1332_s15   ;;  %s27_s25 = sadd.s32 1, %s1328_s14 }
   0xf   : > { %s1646_s20 = scalar_select %p1404_p8, 1, 0 }
  0x10   : > { %p1105_p9 = pneg %p1404_p8  ;;  %s24_s26 = ssub.s32 %s1332_s15, %s1417_s24 }
  0x11   : > { %s1204_s29 = scalar_lea.hbm %s1638_s1, 5120 }
  0x12   : > { %p1412_p10 = pnand %p1105_p9, %p1641_p1  ;;  %p1205_p11 = scmp.ne.s32.totalorder %s1638_s1, %s1204_s29 }
  0x13   : > { %p1211_p3 = scmp.lt.u32.totalorder %s1204_s29, %s1638_s1 }
  0x14   : > { %p1206_p12 = pneg %p1412_p10 }
  0x16   : > { %p1207_p13 = pnand %p1206_p12, %p1205_p11 }
  0x18   : > { %p1208_p0 = pneg %p1207_p13 }
  0x1a   : > { %p1213_p5 = pnand %p1211_p3, %p1208_p0 }
  0x1c   : > { %1216 = shalt.err (!%p1213_p5)
}
  0x1d   : > { %s1217_s7 = scalar_lea.vmem %s132_s22, 5120  ;;  %p1225_p2 = scmp.lt.s32.totalorder %s132_s22, %s132_s22 }
  0x1e   : > { %p1218_p7 = scmp.ne.s32.totalorder %s132_s22, %s1217_s7  ;;  %p1226_p6 = scmp.lt.s32.totalorder %s1217_s7, %s1217_s7 }
  0x20   : > { %p1220_p9 = pnand %p1218_p7, %p1206_p12  ;;  %p1227_p4 = por %p1226_p6, %p1225_p2 }
  0x22   : > { %p1221_p1 = pneg %p1220_p9 }
  0x24   : > { %p1228_p8 = pnand %p1227_p4, %p1221_p1 }
  0x26   : > { %1231 = shalt.err (!%p1228_p8)
}
  0x27   : > { %s1335_s8 = smov 64   ;;  %s1336_s9 = smov 4  }
  0x28   : > { %1108 = dma.hbm_to_vmem [thread:$0]  (!%p1412_p10), %s1638_s1, 5120, %s132_s22, [#allocation7], %s1335_s8, %s1335_s8, %s1336_s9  }
  0x29   : > { %p25_p11 = scmp.eq.s32.totalorder %s24_s26, 0  ;;  %p34_p2 = scmp.ne.s32.totalorder %s1328_s14, %s1324_s13 }
  0x2a   : > { %p35_p1 = scmp.eq.s32.totalorder %s1332_s15, 0  ;;  %p1118_p4 = scmp.lt.s32.totalorder %s1332_s15, 3 }
  0x2b   : > { %s1443_s17 = scalar_select %p25_p11, %s1328_s14, %s27_s25  }
  0x2c   : > { %p36_p6 = por %p35_p1, %p34_p2  ;;  %p1648_p8 = scmp.eq.s32.totalorder %s1385_s16, 2 }
  0x2d   : > { %s148_s27 = sand.u32 1, %s1328_s14   ;;  %s893_s28 = sshll.u32 %s1332_s15, 7 }
  0x2e   : > { %p1447_p12 = por %p1648_p8, %p34_p2  ;;  %s892_s29 = sshll.u32 %s148_s27, 3 }
  0x2f   : > { %s1456_s4 = scalar_lea.hbm %s1637_s0, %s893_s28  ;;  %s152_s22 = scalar_lea.vmem [#allocation3], %s892_s29 }
  0x30   : > { %s159_s25 = sshll.u32 %s152_s22, 4  ;;  %p1458_p10 = pnand %p1118_p4, %p36_p6  ;;  %s1462_s25 = int_to_ptr.vmem [resolvable:$true] %s159_s25 }
  0x31   : > { %s149_s5 = scalar_lea.sflag [#allocation4], %s148_s27  ;;  %s1232_s6 = scalar_lea.hbm %s1456_s4, 128 }
  0x32   : > { %p1233_p13 = scmp.ne.s32.totalorder %s1456_s4, %s1232_s6  ;;  %p1234_p0 = pneg %p1458_p10 }
  0x33   : > { %s1237_s9 = scalar_lea.hbm %s1637_s0, 384  ;;  %p1238_p7 = scmp.lt.u32.totalorder %s1456_s4, %s1637_s0 }
  0x34   : > { %p1235_p3 = pnand %p1234_p0, %p1233_p13  ;;  %p1239_p9 = scmp.lt.u32.totalorder %s1237_s9, %s1232_s6 }
  0x35   : > { %p1241_p2 = scmp.lt.u32.totalorder %s1232_s6, %s1456_s4 }
  0x36   : > { %p1236_p5 = pneg %p1235_p3  ;;  %p1240_p11 = por %p1239_p9, %p1238_p7 }
  0x38   : > { %p1242_p1 = por %p1241_p2, %p1240_p11 }
  0x3a   : > { %p1243_p4 = pnand %p1242_p1, %p1236_p5 }
  0x3c   : > { %1246 = shalt.err (!%p1243_p4)
}
  0x3d   : > { %s1247_s27 = scalar_lea.vmem %s1462_s25, 128  ;;  %s1337_s28 = smov [#allocation3]  }
  0x3e   : > { %p1248_p6 = scmp.ne.s32.totalorder %s1462_s25, %s1247_s27  ;;  %s1252_s29 = sshll.u32 %s1337_s28, 4  ;;  %s1253_s29 = int_to_ptr.vmem [resolvable:$false] %s1252_s29 }
  0x3f   : > { %s1254_s23 = scalar_lea.vmem %s1253_s29, 256  ;;  %p1255_p3 = scmp.lt.s32.totalorder %s1462_s25, %s1253_s29 }
  0x40   : > { %p1250_p8 = pnand %p1248_p6, %p1234_p0  ;;  %p1256_p7 = scmp.lt.s32.totalorder %s1254_s23, %s1247_s27 }
  0x42   : > { %p1251_p13 = pneg %p1250_p8  ;;  %p1257_p9 = por %p1256_p7, %p1255_p3 }
  0x44   : > { %p1258_p11 = pnand %p1257_p9, %p1251_p13 }
  0x46   : > { %1261 = shalt.err (!%p1258_p11)
}
  0x47   : > { %1112 = dma.hbm_to_vmem [thread:$0]  (!%p1458_p10), %s1456_s4, 128, %s1462_s25, %s149_s5  }
  0x48   : > { %p1651_p5 = scmp.ne.s32.totalorder %s1646_s20, 0 }
  0x49   : > { %s1492_s30 = sand.u32 (!%p1651_p5), 1, %s1324_s13   ;;  %p1652_p0 = scmp.ne.s32.totalorder (!%p1651_p5), %s1644_s18, 0 }
  0x4a   : > { %168 = sbr.rel (%p1651_p5) target bundleno = 611 (0x263), region = 32  ;;  %s895_s22 = sshll.u32 (!%p1651_p5), %s1492_s30, 3 }
  0x4b   : > { %s171_s6 = scalar_lea.sflag (!%p1651_p5), [#allocation4], %s1492_s30  ;;  %s1498_s7 = scalar_lea.vmem (!%p1651_p5), [#allocation3], %s895_s22 }
  0x51   : > { %1307 = dma.done.wait (%p1652_p0), %s171_s6, 128  }
  0x52   : > { %1309 = vsyncadd (%p1652_p0), %s171_s6, 4294967168  ;;  %p1653_p10 = scmp.eq.s32.totalorder %s1385_s16, 0 }
  0x54   : > { %1311 = dma.done.wait (%p1653_p10), [#allocation7], 5120   ;;  %p1654_p2 = pmov %p1653_p10 }
  0x55   : > { %v1338_v0 = vmov 0.0   ;;  %vm1339_vm0 = vmmov 0   ;;  %v1162_v1 = vld [vmem:[#allocation6 + $0xc0] sm:$0xff]   ;;  %v1164_v3 = vld [vmem:[#allocation6 + $0xc8] sm:$0xff]   ;;  %v1166_v5 = vld [vmem:[#allocation6 + $0xd0] sm:$0xff]   ;;  %s898_s18 = sshll.u32 %s1385_s16, 3  ;;  %v212_v19 = vlaneseq }
  0x56   : > { %1313 = vsyncadd (%p1654_p2), [#allocation7], 4294962176  ;;  %990 = vmatprep.subr.bf16.mxu0 %v1338_v0  ;;  %1010 = vmatprep.subr.bf16.mxu1 %v1338_v0  ;;  %v1163_v2 = vld [vmem:[#allocation6 + $0x100] sm:$0xff]   ;;  %v1165_v4 = vld [vmem:[#allocation6 + $0x108] sm:$0xff]   ;;  %s206_s20 = ssub.s32 0, %s898_s18  ;;  %p205_p1 = scmp.lt.s32.totalorder %s898_s18, 0 }
  0x57   : > { %1006 = vmatprep.mubr.msk.bf16.mxu0 %vm1339_vm0, %v1338_v0  ;;  %1026 = vmatprep.mubr.msk.bf16.mxu1 %vm1339_vm0, %v1338_v0  ;;  %v1167_v6 = vld [vmem:[#allocation6 + $0x110] sm:$0xff]   ;;  %v1168_v7 = vld [vmem:[#allocation6 + $0xd8] sm:$0xff]   ;;  %v1170_v9 = vld [vmem:[#allocation6 + $0xe0] sm:$0xff]   ;;  %s899_s4 = smin.u32 %s898_s18, %s206_s20  ;;  %v213_v20 = vshrl.u32 %v212_v19, 7  ;;  %s1536_s9 = scalar_lea.vmem [#allocation8], %s895_s22 }
  0x58   : > { %991 = vmatpush3.bf16.msra.mxu0 %v1162_v1  ;;  %1011 = vmatpush3.bf16.msra.mxu1 %v1163_v2  ;;  %v1169_v8 = vld [vmem:[#allocation6 + $0x118] sm:$0xff]   ;;  %v1171_v10 = vld [vmem:[#allocation6 + $0x120] sm:$0xff]   ;;  %v1172_v11 = vld [vmem:[#allocation6 + $0xe8] sm:$0xff]   ;;  %1178 = sdivrem.u32 %s899_s4, 9 }
  0x59   : > { %992 = vmatprep.subr.bf16.mxu0 %v1338_v0  ;;  %1012 = vmatprep.subr.bf16.mxu1 %v1338_v0  ;;  %v1173_v12 = vld [vmem:[#allocation6 + $0x128] sm:$0xff]   ;;  %v1174_v13 = vld [vmem:[#allocation6 + $0xf0] sm:$0xff]   ;;  %v1176_v15 = vld [vmem:[#allocation6 + $0xf8] sm:$0xff]  }
  0x5a   : > { %v1175_v14 = vld [vmem:[#allocation6 + $0x130] sm:$0xff]   ;;  %v1177_v17 = vld [vmem:[#allocation6 + $0x138] sm:$0xff]  }
  0x5b   : > { %v202_v16 = vld [vmem:[%s1498_s7] sm:$0xff] }
  0x5c   : > { %993 = vmatpush3.bf16.msra.mxu0 %v1164_v3  ;;  %1013 = vmatpush3.bf16.msra.mxu1 %v1165_v4  ;;  %v1509_v18 = vpack.c.bf16 %v202_v16, %v202_v16 }
  0x5d   : > { %994 = vmatprep.subr.bf16.mxu0 %v1338_v0  ;;  %1014 = vmatprep.subr.bf16.mxu1 %v1338_v0 }
  0x60   : > { %995 = vmatpush3.bf16.msra.mxu0 %v1166_v5  ;;  %1015 = vmatpush3.bf16.msra.mxu1 %v1167_v6 }
  0x61   : > { %996 = vmatprep.subr.bf16.mxu0 %v1338_v0  ;;  %1016 = vmatprep.subr.bf16.mxu1 %v1338_v0  ;;  %s1179_s25 = spop.drf %1178 }
  0x62   : > { %s210_s26 = ssub.s32 0, %s1179_s25 }
  0x63   : > { %s1664_s26 = smov (!%p205_p1, %s210_s26), %s1179_s25 }
  0x64   : > { %997 = vmatpush3.bf16.msra.mxu0 %v1168_v7  ;;  %1017 = vmatpush3.bf16.msra.mxu1 %v1169_v8  ;;  %v214_v21 = vstv %s1664_s26  ;;  %s440_s5 = sadd.s32 8, %s1664_s26  ;;  %p439_p4 = scmp.le.s32.totalorder %s1664_s26, 2 }
  0x65   : > { %998 = vmatprep.subr.bf16.mxu0 %v1338_v0  ;;  %1018 = vmatprep.subr.bf16.mxu1 %v1338_v0  ;;  %v215_v22 = vadd.s32 %v214_v21, %v213_v20  ;;  %p441_p6 = scmp.gt.s32.totalorder %s440_s5, 9 }
  0x67   : > { %v216_v23 = vcvt.s32.f32 %v215_v22  ;;  %p1514_p8 = por %p441_p6, %p439_p4 }
  0x68   : > { %999 = vmatpush3.bf16.msra.mxu0 %v1170_v9  ;;  %1019 = vmatpush3.bf16.msra.mxu1 %v1171_v10  ;;  %v1180_v42 = vld [vmem:[#allocation6] sm:$0xff] (%p1514_p8)   ;;  %v1340_v43 = vmov (%p1514_p8), 0.0   ;;  %v1181_v44 = vld [vmem:[#allocation6 + $0x8] sm:$0xff] (%p1514_p8)   ;;  %vm1341_vm3 = vmmov (%p1514_p8), 0   ;;  %v1182_v45 = vld [vmem:[#allocation6 + $0x10] sm:$0xff] (%p1514_p8)  }
  0x69   : > { %1000 = vmatprep.subr.bf16.mxu0 %v1338_v0  ;;  %1020 = vmatprep.subr.bf16.mxu1 %v1338_v0  ;;  %v217_v24 = vadd.f32 0.5, %v216_v23  ;;  %v1188_v46 = vld [vmem:[#allocation6 + $0x40] sm:$0xff] (%p1514_p8)   ;;  %v1183_v47 = vld [vmem:[#allocation6 + $0x18] sm:$0xff] (%p1514_p8)   ;;  %v1190_v48 = vld [vmem:[#allocation6 + $0x48] sm:$0xff] (%p1514_p8)  }
  0x6a   : > { %v1184_v49 = vld [vmem:[#allocation6 + $0x20] sm:$0xff] (%p1514_p8)   ;;  %v1192_v50 = vld [vmem:[#allocation6 + $0x50] sm:$0xff] (%p1514_p8)   ;;  %v1185_v51 = vld [vmem:[#allocation6 + $0x28] sm:$0xff] (%p1514_p8)  }
  0x6b   : > { %v218_v25 = vmul.f32 0.11111111, %v217_v24  ;;  %v1194_v52 = vld [vmem:[#allocation6 + $0x58] sm:$0xff] (%p1514_p8)   ;;  %v1186_v53 = vld [vmem:[#allocation6 + $0x30] sm:$0xff] (%p1514_p8)   ;;  %v1196_v54 = vld [vmem:[#allocation6 + $0x60] sm:$0xff] (%p1514_p8)  }
  0x6c   : > { %1001 = vmatpush3.bf16.msra.mxu0 %v1172_v11  ;;  %1021 = vmatpush3.bf16.msra.mxu1 %v1173_v12  ;;  %v1187_v55 = vld [vmem:[#allocation6 + $0x38] sm:$0xff] (%p1514_p8)   ;;  %v1198_v56 = vld [vmem:[#allocation6 + $0x68] sm:$0xff] (%p1514_p8)   ;;  %v1189_v58 = vld [vmem:[#allocation6 + $0x80] sm:$0xff] (%p1514_p8)  }
  0x6d   : > { %1002 = vmatprep.subr.bf16.mxu0 %v1338_v0  ;;  %1022 = vmatprep.subr.bf16.mxu1 %v1338_v0  ;;  %v219_v26 = vfloor.f32 %v218_v25  ;;  %v1200_v59 = vld [vmem:[#allocation6 + $0x70] sm:$0xff] (%p1514_p8)   ;;  %v1191_v60 = vld [vmem:[#allocation6 + $0x88] sm:$0xff] (%p1514_p8)   ;;  %v1202_v61 = vld [vmem:[#allocation6 + $0x78] sm:$0xff] (%p1514_p8)  }
  0x6e   : > { %v1193_v62 = vld [vmem:[#allocation6 + $0x90] sm:$0xff] (%p1514_p8)   ;;  %v1197_v1 = vld [vmem:[#allocation6 + $0xa0] sm:$0xff] (%p1514_p8)   ;;  %v1199_v2 = vld [vmem:[#allocation6 + $0xa8] sm:$0xff] (%p1514_p8)  }
  0x6f   : > { %v1095_v27 = vtrunc.f32 %v219_v26  ;;  %v1201_v3 = vld [vmem:[#allocation6 + $0xb0] sm:$0xff] (%p1514_p8)   ;;  %v1203_v4 = vld [vmem:[#allocation6 + $0xb8] sm:$0xff] (%p1514_p8)  }
  0x70   : > { %1003 = vmatpush3.bf16.msra.mxu0 %v1174_v13  ;;  %1023 = vmatpush3.bf16.msra.mxu1 %v1175_v14 }
  0x71   : > { %1004 = vmatprep.subr.bf16.mxu0 %v1338_v0  ;;  %1024 = vmatprep.subr.bf16.mxu1 %v1338_v0  ;;  %v1096_v28 = vcvt.f32.s32 %v1095_v27  ;;  %v1195_v0 = vld [vmem:[#allocation6 + $0x98] sm:$0xff] (%p1514_p8)  }
  0x73   : > { %v221_v29 = vmul.u32 9, %v1096_v28 }
  0x74   : > { %1005 = vmatpush3.bf16.msra.mxu0 %v1176_v15  ;;  %1025 = vmatpush3.bf16.msra.mxu1 %v1177_v17 }
  0x75   : > { %v1518_v30 = vsub.s32 %v215_v22, %v221_v29  ;;  %1050 = vmatprep.subr.bf16.mxu0 (%p1514_p8), %v1340_v43  ;;  %1030 = vmatprep.subr.bf16.mxu1 (%p1514_p8), %v1340_v43 }
  0x77   : > { %1007 = vmatmul.mubr.bf16.vlgmr.msra.gmra.mrb[0].mxu0 %v1509_v18  ;;  %1027 = vmatmul.mubr.bf16.vlgmr.msra.gmra.mrb[0].mxu1 %v1509_v18  ;;  %vm223_vm1 = vcmp.ge.s32.totalorder %v1518_v30, 3  ;;  %v224_v31 = vand.u32 1, %v1518_v30  ;;  %vm446_vm4 = vcmp.eq.s32.totalorder (%p1514_p8), %v1518_v30, 0  ;;  %vm467_vm6 = vcmp.eq.s32.totalorder (%p1514_p8), %v1518_v30, 1 }
  0x78   : > { %1051 = vmatpush3.bf16.msra.mxu0 (%p1514_p8), %v1180_v42  ;;  %1066 = vmatprep.mubr.msk.bf16.mxu0 (%p1514_p8), %vm1341_vm3, %v1340_v43  ;;  %vm449_vm5 = vmpackc.low (%p1514_p8), %vm446_vm4, %vm446_vm4  ;;  %vm665_vm8 = vcmp.eq.s32.totalorder (%p1514_p8), %v1518_v30, 2 }
  0x79   : > { %vm1524_vm2 = vcmp.eq.s32.totalorder %v224_v31, 1  ;;  %1052 = vmatprep.subr.bf16.mxu0 (%p1514_p8), %v1340_v43  ;;  %1046 = vmatprep.mubr.msk.bf16.mxu1 (%p1514_p8), %vm1341_vm3, %v1340_v43  ;;  %v450_v57 = vsel (%p1514_p8), %vm449_vm5, %v1509_v18, 0  ;;  %vm470_vm7 = vmpackc.low (%p1514_p8), %vm467_vm6, %vm467_vm6 }
  0x7a   : > { %1031 = vmatpush3.bf16.msra.mxu1 (%p1514_p8), %v1188_v46  ;;  %v471_v63 = vsel (%p1514_p8), %vm470_vm7, %v1509_v18, 0  ;;  %vm668_vm9 = vmpackc.low (%p1514_p8), %vm665_vm8, %vm665_vm8 }
  0x7b   : > { %1032 = vmatprep.subr.bf16.mxu1 (%p1514_p8), %v1340_v43  ;;  %v669_v5 = vsel (%p1514_p8), %vm668_vm9, %v1509_v18, 0 }
  0x7c   : > { %1053 = vmatpush3.bf16.msra.mxu0 (%p1514_p8), %v1181_v44 }
  0x7d   : > { %1054 = vmatprep.subr.bf16.mxu0 (%p1514_p8), %v1340_v43 }
  0x7e   : > { %1033 = vmatpush3.bf16.msra.mxu1 (%p1514_p8), %v1190_v48 }
  0x7f   : > { %1034 = vmatprep.subr.bf16.mxu1 (%p1514_p8), %v1340_v43 }
  0x80   : > { %1055 = vmatpush3.bf16.msra.mxu0 (%p1514_p8), %v1182_v45 }
  0x81   : > { %1056 = vmatprep.subr.bf16.mxu0 (%p1514_p8), %v1340_v43 }
  0x82   : > { %1035 = vmatpush3.bf16.msra.mxu1 (%p1514_p8), %v1192_v50 }
  0x83   : > { %1036 = vmatprep.subr.bf16.mxu1 (%p1514_p8), %v1340_v43 }
  0x84   : > { %1057 = vmatpush3.bf16.msra.mxu0 (%p1514_p8), %v1183_v47 }
  0x85   : > { %1058 = vmatprep.subr.bf16.mxu0 (%p1514_p8), %v1340_v43 }
  0x86   : > { %1037 = vmatpush3.bf16.msra.mxu1 (%p1514_p8), %v1194_v52 }
  0x87   : > { %1038 = vmatprep.subr.bf16.mxu1 (%p1514_p8), %v1340_v43 }
  0x88   : > { %1059 = vmatpush3.bf16.msra.mxu0 (%p1514_p8), %v1184_v49 }
  0x89   : > { %1060 = vmatprep.subr.bf16.mxu0 (%p1514_p8), %v1340_v43 }
  0x8a   : > { %1039 = vmatpush3.bf16.msra.mxu1 (%p1514_p8), %v1196_v54 }
  0x8b   : > { %1040 = vmatprep.subr.bf16.mxu1 (%p1514_p8), %v1340_v43 }
  0x8c   : > { %1061 = vmatpush3.bf16.msra.mxu0 (%p1514_p8), %v1185_v51 }
  0x8d   : > { %1062 = vmatprep.subr.bf16.mxu0 (%p1514_p8), %v1340_v43 }
  0x8e   : > { %1041 = vmatpush3.bf16.msra.mxu1 (%p1514_p8), %v1198_v56 }
  0x8f   : > { %1042 = vmatprep.subr.bf16.mxu1 (%p1514_p8), %v1340_v43 }
  0x90   : > { %1063 = vmatpush3.bf16.msra.mxu0 (%p1514_p8), %v1186_v53 }
  0x91   : > { %1064 = vmatprep.subr.bf16.mxu0 (%p1514_p8), %v1340_v43 }
  0x92   : > { %1043 = vmatpush3.bf16.msra.mxu1 (%p1514_p8), %v1200_v59 }
  0x93   : > { %1044 = vmatprep.subr.bf16.mxu1 (%p1514_p8), %v1340_v43 }
  0x94   : > { %1065 = vmatpush3.bf16.msra.mxu0 (%p1514_p8), %v1187_v55 }
  0x95   : > { %1070 = vmatprep.subr.bf16.mxu0 (%p1514_p8), %v1340_v43 }
  0x96   : > { %1045 = vmatpush3.bf16.msra.mxu1 (%p1514_p8), %v1202_v61 }
 0x147   : > { %445 = sbr.rel (!%p1514_p8) target bundleno = 580 (0x244), region = 44 }
 0x14a   : > { %v1522_v32 = vpop.f32.mrb[0].mxu0  ;;  %v1528_v34 = vpop.f32.mrb[0].mxu1 }
 0x14b   : > { %v1008_v35 = vpop.f32.mrb[1].mxu0  ;;  %v438_v36 = vsel %vm1524_vm2, %v1522_v32, %v1528_v34  ;;  %v1028_v37 = vpop.f32.mrb[1].mxu1 }
 0x14c   : > { %v328_v38 = vpop.f32.mrb[2].mxu0  ;;  %v433_v39 = vpop.f32.mrb[2].mxu1 }
 0x14d   : > { %v1009_v40 = vpop.f32.mrb[3].mxu0  ;;  %v1029_v41 = vpop.f32.mrb[3].mxu1  ;;  %1067 = vmatmul.mubr.bf16.vlgmr.msra.gmra.mrb[0].mxu0 (%p1514_p8), %v450_v57  ;;  %1047 = vmatmul.mubr.bf16.vlgmr.msra.gmra.mrb[0].mxu1 (%p1514_p8), %v471_v63 }
 0x14e   : > { %1071 = vmatpush3.bf16.msra.mxu0 %v1189_v58  ;;  %1086 = vmatprep.mubr.msk.bf16.mxu0 %vm1341_vm3, %v1340_v43 }
 0x14f   : > { %1072 = vmatprep.subr.bf16.mxu0 %v1340_v43 }
 0x152   : > { %1073 = vmatpush3.bf16.msra.mxu0 %v1191_v60 }
 0x153   : > { %1074 = vmatprep.subr.bf16.mxu0 %v1340_v43 }
 0x156   : > { %1075 = vmatpush3.bf16.msra.mxu0 %v1193_v62 }
 0x157   : > { %1076 = vmatprep.subr.bf16.mxu0 %v1340_v43 }
 0x15a   : > { %1077 = vmatpush3.bf16.msra.mxu0 %v1195_v0 }
 0x15b   : > { %1078 = vmatprep.subr.bf16.mxu0 %v1340_v43 }
 0x15e   : > { %1079 = vmatpush3.bf16.msra.mxu0 %v1197_v1 }
 0x15f   : > { %1080 = vmatprep.subr.bf16.mxu0 %v1340_v43 }
 0x162   : > { %1081 = vmatpush3.bf16.msra.mxu0 %v1199_v2 }
 0x163   : > { %1082 = vmatprep.subr.bf16.mxu0 %v1340_v43 }
 0x166   : > { %1083 = vmatpush3.bf16.msra.mxu0 %v1201_v3 }
 0x167   : > { %1084 = vmatprep.subr.bf16.mxu0 %v1340_v43 }
 0x16a   : > { %1085 = vmatpush3.bf16.msra.mxu0 %v1203_v4 }
 0x16d   : > { %1087 = vmatmul.mubr.bf16.vlgmr.msra.gmra.mrb[0].mxu0 %v669_v5 }
 0x220   : > { %v571_v6 = vpop.f32.mrb[0].mxu1 }
 0x221   : > { %v1048_v7 = vpop.f32.mrb[1].mxu1 }
 0x222   : > { %v574_v8 = vpop.f32.mrb[2].mxu1 }
 0x223   : > { %v1049_v9 = vpop.f32.mrb[3].mxu1 }
 0x240   : > { %v769_v10 = vpop.f32.mrb[0].mxu0 }
 0x241   : > { %v1090_v11 = vadd.f32 %v769_v10, %v571_v6  ;;  %v1088_v12 = vpop.f32.mrb[1].mxu0 }
 0x242   : > { %v772_v13 = vpop.f32.mrb[2].mxu0 }
 0x243   : > { %776 = vst [vmem:[#allocation2] sm:$0xff] %v1090_v11  ;;  %v1089_v14 = vpop.f32.mrb[3].mxu0 }
 0x244 PF: > { %779 = sbr.rel (%p1514_p8) target bundleno = 587 (0x24b), region = 48  ;;  %v1342_v15 = vmov (!%p1514_p8), 0.0  }
 0x245   : > { %780 = vst [vmem:[#allocation2] sm:$0xff] (!%p1514_p8), %v1342_v15 }
 0x24b PF: > { %v940_v17 = vld [vmem:[%s1639_s2] ss:$0 sm:$0xff]  ;;  %s942_s27 = sshll.u32 %s1385_s16, 7  ;;  %s808_s28 = sshll.u32 %s1536_s9, 4  ;;  %s1595_s28 = int_to_ptr.vmem [resolvable:$true] %s808_s28 }
 0x24c   : > { %v781_v16 = vld [vmem:[#allocation2] sm:$0xff]  ;;  %s1593_s22 = scalar_lea.hbm %s1640_s3, %s942_s27  ;;  %s795_s16 = scalar_lea.sflag [#allocation5], %s1492_s30 }
 0x24d   : > { %v784_v18 = vsel %vm223_vm1, %v438_v36, %v781_v16  ;;  %s1262_s6 = scalar_lea.vmem %s1595_s28, 128  ;;  %s1343_s7 = smov [#allocation8]  }
 0x24e   : > { %v792_v19 = vadd.f32 %v940_v17, %v784_v18  ;;  %p1263_p13 = scmp.ne.s32.totalorder %s1595_s28, %s1262_s6  ;;  %s1266_s18 = sshll.u32 %s1343_s7, 4  ;;  %s1267_s18 = int_to_ptr.vmem [resolvable:$false] %s1266_s18 }
 0x24f   : > { %s1268_s20 = scalar_lea.vmem %s1267_s18, 256  ;;  %p1269_p9 = scmp.lt.s32.totalorder %s1595_s28, %s1267_s18 }
 0x250   : > { %793 = vst [vmem:[%s1536_s9] sm:$0xff] %v792_v19  ;;  %p1264_p3 = pnand %p1263_p13, %p1447_p12  ;;  %p1270_p11 = scmp.lt.s32.totalorder %s1268_s20, %s1262_s6 }
 0x252   : > { %p1265_p7 = pneg %p1264_p3  ;;  %p1271_p5 = por %p1270_p11, %p1269_p9 }
 0x254   : > { %p1272_p0 = pnand %p1271_p5, %p1265_p7 }
 0x256   : > { %1275 = shalt.err (!%p1272_p0)
}
 0x257   : > { %s1276_s30 = scalar_lea.hbm %s1593_s22, 128  ;;  %s1280_s26 = scalar_lea.hbm %s1640_s3, 384 }
 0x258   : > { %p1277_p10 = scmp.ne.s32.totalorder %s1593_s22, %s1276_s30  ;;  %p1281_p4 = scmp.lt.u32.totalorder %s1593_s22, %s1640_s3 }
 0x259   : > { %p1282_p6 = scmp.lt.u32.totalorder %s1280_s26, %s1276_s30  ;;  %p1284_p13 = scmp.lt.u32.totalorder %s1276_s30, %s1593_s22 }
 0x25a   : > { %p1278_p2 = pnand %p1277_p10, %p1447_p12 }
 0x25b   : > { %p1283_p8 = por %p1282_p6, %p1281_p4 }
 0x25c   : > { %p1279_p1 = pneg %p1278_p2 }
 0x25d   : > { %p1285_p3 = por %p1284_p13, %p1283_p8 }
 0x25f   : > { %p1286_p7 = pnand %p1285_p3, %p1279_p1 }
 0x261   : > { %1289 = shalt.err (!%p1286_p7)
}
 0x262   : > { %1103 = dma.vmem_to_hbm [thread:$0]  (%p1447_p12), %s1595_s28, 128, %s1593_s22, %s795_s16  }
 0x263 PF: > { %p1120_p9 = scmp.ge.s32.totalorder %s1332_s15, 2  ;;  %s820_s9 = sand.u32 1, %s1320_s12  }
 0x264   : > { %p1658_p11 = scmp.ne.s32.totalorder %s1645_s19, 0  ;;  %s821_s10 = scalar_lea.sflag [#allocation5], %s820_s9 }
 0x266   : > { %p1114_p5 = pnand %p1120_p9, %p1658_p11 }
 0x268   : > { %1315 = dma.done.wait (!%p1114_p5), %s821_s10, 128  }
 0x269   : > { %1317 = vsyncadd (!%p1114_p5), %s821_s10, 4294967168  ;;  %p17_p0 = scmp.ge.s32.totalorder %s1417_s24, 5   ;;  %s1659_s12 = smov %s1324_s13 }
 0x26a   : > { %s1660_s13 = smov %s1328_s14  ;;  %s1661_s14 = smov %s1443_s17 }
 0x26b   : > { %s1662_s15 = smov %s1417_s24  ;;  %19 = sbr.rel (!%p17_p0) target bundleno = 6 (0x6), region = 93 }
 0x272   :  { %826 = vsyncpa [#allocation4], 1 }
 0x273   :  { %828 = vsyncpa [#allocation4 + $0x1], 1 }
 0x274   :  { %829 = vsyncpa [#allocation7], 1 }
 0x275   :  { %830 = vsyncpa [#allocation5], 1 }
 0x276   :  { %832 = vsyncpa [#allocation5 + $0x1], 1 }

</bundles_post_ra>
